<compile_context>
chip_gen: v7x
topology: tpu7x:2x2x1
jax: 0.10.0
libtpu: 0.0.40
codegen_flags: <defaults>
</compile_context>

<pallas_src>
import functools

import jax
import jax.numpy as jnp
from jax.experimental import pallas as pl
from jax.experimental.pallas import tpu as pltpu


def _round_up(v: int, m: int) -> int:
    return (v + m - 1) // m * m


def _pick_tile(dim: int, max_tile: int, unit: int) -> int:
    """Largest multiple of `unit` that is <= max_tile and divides `dim` (dim % unit == 0)."""
    t = min(max_tile, dim)
    t = max((t // unit) * unit, unit)
    while t > unit and dim % t != 0:
        t -= unit
    return t


def _matmul_bias_act_kernel(x_ref, w_ref, b_ref, o_ref, *, apply_silu):
    """Single K-step tile: MXU matmul + folded-BN bias + SiLU, no accumulator scratch."""
    y = jnp.dot(x_ref[...], w_ref[...], preferred_element_type=jnp.float32)
    y = y + b_ref[...]  # folded BatchNorm bias, broadcast (1, tn)
    if apply_silu:
        # SiLU: y * sigmoid(y).  exp rides the EUP slot; reciprocal kept exact
        # (approx=False) for bit-faithful numerics.
        y = y * pl.reciprocal(1.0 + jnp.exp(-y), approx=False)
    o_ref[...] = y.astype(o_ref.dtype)


def _matmul_bias_act_acc_kernel(x_ref, w_ref, b_ref, o_ref, acc_ref, *, apply_silu):
    """Multi K-step tile: accumulate in VMEM f32; fused bias + SiLU on the last step."""
    k = pl.program_id(2)

    @pl.when(k == 0)
    def _init():
        acc_ref[...] = jnp.zeros_like(acc_ref)

    acc_ref[...] += jnp.dot(
        x_ref[...], w_ref[...], preferred_element_type=jnp.float32
    )

    @pl.when(k == pl.num_programs(2) - 1)
    def _finalize():
        y = acc_ref[...] + b_ref[...]
        if apply_silu:
            y = y * pl.reciprocal(1.0 + jnp.exp(-y), approx=False)
        o_ref[...] = y.astype(o_ref.dtype)


def conv_block_forward(
    x,
    weight,
    gamma,
    beta,
    running_mean,
    running_var,
    *,
    stride: int = 1,
    padding: int = 1,
    eps: float = 1e-5,
    activation: str | None = "silu",
    tile_m: int = 1024,
    tile_n: int = 256,
    tile_k: int = 512,
):
    """Conv2d(bias=False) -> BatchNorm2d(eval) -> [SiLU], NCHW in / NCHW out."""
    N, C_in, H, W = x.shape
    C_out, _, KH, KW = weight.shape
    sh = sw = int(stride)
    ph = pw = int(padding)
    OH = (H + 2 * ph - KH) // sh + 1
    OW = (W + 2 * pw - KW) // sw + 1
    apply_silu = activation == "silu"

    # ---- fold BatchNorm (inference) into the conv weight / bias -------------
    scale = gamma / jnp.sqrt(running_var + eps)            # (C_out,)
    w_folded = weight * scale[:, None, None, None]
    b_folded = beta - running_mean * scale                 # (C_out,)

    # ---- im2col: rows = (n, oh, ow), cols = (kh, kw, c_in) -------------------
    x_nhwc = jnp.transpose(x, (0, 2, 3, 1))                # N,H,W,C
    x_padded = jnp.pad(x_nhwc, ((0, 0), (ph, ph), (pw, pw), (0, 0)))
    patches = []
    for kh in range(KH):
        for kw in range(KW):
            patches.append(
                x_padded[:, kh:kh + sh * OH:sh, kw:kw + sw * OW:sw, :]
            )
    cols = jnp.concatenate(patches, axis=-1).reshape(N * OH * OW, KH * KW * C_in)
    # weight matrix with matching (kh, kw, c_in) row order, c_out columns
    w_mat = jnp.transpose(w_folded, (2, 3, 1, 0)).reshape(KH * KW * C_in, C_out)

    M, K = cols.shape

    # ---- tiling (all blocks (8,128)-aligned or full-dim) ---------------------
    M8 = _round_up(M, 8)
    if M8 <= tile_m:
        tm, M_pad = M8, M8
    else:
        tm = _round_up(tile_m, 8)
        M_pad = _round_up(M, tm)

    K8 = _round_up(K, 8)
    if K8 <= tile_k:
        # Whole reduction in one step: pad K only to a sublane multiple (full-dim
        # block), avoiding 128-rounding of the (large) im2col operand.
        tk, K_pad = K8, K8
        single_k = True
    else:
        K_pad = _round_up(K, 128)
        tk = _pick_tile(K_pad, tile_k, 128)
        single_k = (K_pad == tk)

    N_pad = _round_up(C_out, 128)                          # lane-dense output
    tn = _pick_tile(N_pad, tile_n, 128)

    cols_p = jnp.pad(cols, ((0, M_pad - M), (0, K_pad - K)))
    w_p = jnp.pad(w_mat, ((0, K_pad - K), (0, N_pad - C_out)))
    b_p = jnp.pad(b_folded, (0, N_pad - C_out)).reshape(1, N_pad)

    cost = pl.CostEstimate(
        flops=2 * M_pad * K_pad * N_pad,
        transcendentals=M_pad * N_pad if apply_silu else 0,
        bytes_accessed=4 * (M_pad * K_pad + K_pad * N_pad + M_pad * N_pad + N_pad),
    )

    if single_k:
        kernel = functools.partial(_matmul_bias_act_kernel, apply_silu=apply_silu)
        grid_spec = pltpu.PrefetchScalarGridSpec(
            num_scalar_prefetch=0,
            grid=(M_pad // tm, N_pad // tn),
            in_specs=[
                pl.BlockSpec((tm, tk), lambda i, j: (i, 0)),   # im2col cols
                pl.BlockSpec((tk, tn), lambda i, j: (0, j)),   # folded weights
                pl.BlockSpec((1, tn), lambda i, j: (0, j)),    # folded bias
            ],
            out_specs=pl.BlockSpec((tm, tn), lambda i, j: (i, j)),
        )
        dim_sem = ("parallel", "parallel")
    else:
        kernel = functools.partial(_matmul_bias_act_acc_kernel, apply_silu=apply_silu)
        grid_spec = pltpu.PrefetchScalarGridSpec(
            num_scalar_prefetch=0,
            grid=(M_pad // tm, N_pad // tn, K_pad // tk),
            in_specs=[
                pl.BlockSpec((tm, tk), lambda i, j, k: (i, k)),
                pl.BlockSpec((tk, tn), lambda i, j, k: (k, j)),
                pl.BlockSpec((1, tn), lambda i, j, k: (0, j)),
            ],
            out_specs=pl.BlockSpec((tm, tn), lambda i, j, k: (i, j)),
            scratch_shapes=[pltpu.VMEM((tm, tn), jnp.float32)],
        )
        dim_sem = ("parallel", "parallel", "arbitrary")

    out_p = pl.pallas_call(
        kernel,
        out_shape=jax.ShapeDtypeStruct((M_pad, N_pad), x.dtype),
        grid_spec=grid_spec,
        compiler_params=pltpu.CompilerParams(dimension_semantics=dim_sem),
        cost_estimate=cost,
    )(cols_p, w_p, b_p)

    out = out_p[:M, :C_out].reshape(N, OH, OW, C_out)
    # TODO(synk): optional `pool` (applied before activation in the reference
    # module) is not implemented; the example uses the default pool=None.
    return jnp.transpose(out, (0, 3, 1, 2))  # back to NCHW


def _reference(x, weight, gamma, beta, mean, var, *, stride, padding, eps=1e-5):
    """Pure-JAX reference: conv -> BN(eval) -> SiLU."""
    y = jax.lax.conv_general_dilated(
        x,
        weight,
        window_strides=(stride, stride),
        padding=((padding, padding), (padding, padding)),
        dimension_numbers=("NCHW", "OIHW", "NCHW"),
        precision=jax.lax.Precision.HIGHEST,
    )
    inv = 1.0 / jnp.sqrt(var + eps)
    y = (y - mean[None, :, None, None]) * inv[None, :, None, None]
    y = y * gamma[None, :, None, None] + beta[None, :, None, None]
    return y * jax.nn.sigmoid(y)


if __name__ == "__main__":
    key = jax.random.PRNGKey(0)
    k1, k2, k3, k4, k5, k6 = jax.random.split(key, 6)

    N, C_in, H, W = 2, 4, 16, 16
    C_out, KS = 16, 3
    stride, padding = 1, 1

    x = jax.random.normal(k1, (N, C_in, H, W), dtype=jnp.float32)
    weight = jax.random.normal(k2, (C_out, C_in, KS, KS), dtype=jnp.float32) * 0.1
    gamma = 1.0 + 0.1 * jax.random.normal(k3, (C_out,), dtype=jnp.float32)
    beta = 0.1 * jax.random.normal(k4, (C_out,), dtype=jnp.float32)
    running_mean = 0.1 * jax.random.normal(k5, (C_out,), dtype=jnp.float32)
    running_var = (
        jax.nn.softplus(jax.random.normal(k6, (C_out,), dtype=jnp.float32)) + 0.5
    )

    y = jax.block_until_ready(
        conv_block_forward(
            x, weight, gamma, beta, running_mean, running_var,
            stride=stride, padding=padding, activation="silu",
        )
    )

    y_ref = _reference(
        x, weight, gamma, beta, running_mean, running_var,
        stride=stride, padding=padding,
    )

    assert y.shape == (N, C_out, H, W) and y.dtype == x.dtype
    max_err = float(jnp.max(jnp.abs(y - y_ref)))
    assert jnp.allclose(y, y_ref, atol=1e-3, rtol=1e-3), f"max_err={max_err}"

    print("KERNEL_OK")
</pallas_src>

<mosaic_0001>
module attributes {stable_mosaic.version = 11 : i64} {
  func.func @_matmul_bias_act_kernel(%arg0: i32, %arg1: i32, %arg2: memref<512x40xf32, #tpu.memory_space<vmem>>, %arg3: memref<40x128xf32, #tpu.memory_space<vmem>>, %arg4: memref<1x128xf32, #tpu.memory_space<vmem>>, %arg5: memref<512x128xf32, #tpu.memory_space<vmem>>) attributes {dimension_semantics = [#tpu.dimension_semantics<parallel>, #tpu.dimension_semantics<parallel>], iteration_bounds = array<i64: 1, 1>, scalar_prefetch = 0 : i64, scratch_operands = 0 : i64, tpu.core_type = #tpu.core_type<tc>, window_params = [{transform_indices = @transform_0, window_bounds = array<i64: 512, 40>}, {transform_indices = @transform_1, window_bounds = array<i64: 40, 128>}, {transform_indices = @transform_2, window_bounds = array<i64: 1, 128>}, {transform_indices = @transform_3, window_bounds = array<i64: 512, 128>}]} {
    %c0 = arith.constant 0 : index
    %c0_0 = arith.constant 0 : index
    %0 = vector.load %arg2[%c0, %c0_0] : memref<512x40xf32, #tpu.memory_space<vmem>>, vector<512x40xf32>
    %c0_1 = arith.constant 0 : index
    %c0_2 = arith.constant 0 : index
    %1 = vector.load %arg3[%c0_1, %c0_2] : memref<40x128xf32, #tpu.memory_space<vmem>>, vector<40x128xf32>
    %cst = arith.constant dense<0.000000e+00> : vector<512x128xf32>
    %2 = tpu.matmul %0, %1, %cst {dimension_numbers = #tpu.dot_dimension_numbers<[1], [0], [0], [1], [0, 0, 1, 1], [], []>} : vector<512x40xf32>, vector<40x128xf32>, vector<512x128xf32> -> vector<512x128xf32>
    %c0_3 = arith.constant 0 : index
    %c0_4 = arith.constant 0 : index
    %3 = vector.load %arg4[%c0_3, %c0_4] : memref<1x128xf32, #tpu.memory_space<vmem>>, vector<1x128xf32>
    %4 = vector.broadcast %3 : vector<1x128xf32> to vector<512x128xf32>
    %5 = arith.addf %2, %4 : vector<512x128xf32>
    %cst_5 = arith.constant 0.000000e+00 : f32
    %6 = vector.broadcast %cst_5 : f32 to vector<512x128xf32>
    %7 = arith.subf %6, %5 : vector<512x128xf32>
    %8 = math.exp %7 : vector<512x128xf32>
    %cst_6 = arith.constant 1.000000e+00 : f32
    %9 = vector.broadcast %cst_6 : f32 to vector<512x128xf32>
    %10 = arith.addf %9, %8 : vector<512x128xf32>
    %11 = tpu.reciprocal %10 : vector<512x128xf32> -> vector<512x128xf32>
    %12 = arith.mulf %5, %11 : vector<512x128xf32>
    %c0_7 = arith.constant 0 : index
    %c0_8 = arith.constant 0 : index
    %13 = vector.load %arg5[%c0_7, %c0_8] : memref<512x128xf32, #tpu.memory_space<vmem>>, vector<512x128xf32>
    tpu.vector_store %arg5[%c0_7, %c0_8], %12 {strides = array<i32>} : memref<512x128xf32, #tpu.memory_space<vmem>>, vector<512x128xf32>,
    return
  }
  func.func @transform_0(%arg0: i32, %arg1: i32) -> (i32, i32) {
    %c0_i32 = arith.constant 0 : i32
    %c0_i32_0 = arith.constant 0 : i32
    return %arg0, %c0_i32 : i32, i32
  }
  func.func @transform_1(%arg0: i32, %arg1: i32) -> (i32, i32) {
    %c0_i32 = arith.constant 0 : i32
    %c0_i32_0 = arith.constant 0 : i32
    return %c0_i32, %arg1 : i32, i32
  }
  func.func @transform_2(%arg0: i32, %arg1: i32) -> (i32, i32) {
    %c0_i32 = arith.constant 0 : i32
    %c0_i32_0 = arith.constant 0 : i32
    return %c0_i32, %arg1 : i32, i32
  }
  func.func @transform_3(%arg0: i32, %arg1: i32) -> (i32, i32) {
    %c0_i32 = arith.constant 0 : i32
    return %arg0, %arg1 : i32, i32
  }
}

</mosaic_0001>

<bundles_post_ra>
// kernel: tpu_custom_call.1
= control target key start
LH: loop header
LB: loop body
LE: loop exit
PB: predicated region body
PF: predicated region fallthrough
CT: control target
= control target key end

     0   :  { %vm91_vm0 = vcmask 326656   ;;  %s2413_s0 = inlined_call_operand.vmem [shape: f32[512,40], index: 0, kind: input, shape index: {}]   ;;  %s2414_s1 = inlined_call_operand.vmem [shape: f32[40,128], index: 1, kind: input, shape index: {}]   ;;  %s2415_s2 = inlined_call_operand.vmem [shape: f32[1,128], index: 2, kind: input, shape index: {}]   ;;  %s2416_s3 = inlined_call_operand.hbm [shape: f32[512,128], index: 3, kind: output, shape index: {}]  }
   0x1   :  { %v79_v0 = vld [vmem:[%s2414_s1] sm:$0xff]  ;;  %v80_v1 = vld [vmem:[%s2414_s1 + $0x8] sm:$0xff]  ;;  %v81_v2 = vld [vmem:[%s2414_s1 + $0x10] sm:$0xff] }
   0x2   :  { %v1373_v3 = vpack.c.bf16 %v80_v1, %v79_v0  ;;  %v82_v4 = vld [vmem:[%s2414_s1 + $0x18] sm:$0xff]  ;;  %v15_v5 = vld [vmem:[%s2413_s0] sm:$0xff]  ;;  %v16_v9 = vld [vmem:[%s2413_s0 + $0x8] sm:$0xff] }
   0x3   :  { %v1377_v6 = vpack.c.bf16 %v82_v4, %v81_v2  ;;  %1277 = vmatprep.mubr.msk.f32.mxu0 %vm91_vm0, %v15_v5  ;;  %v47_v7 = vld [vmem:[%s2413_s0 + $0x100] sm:$0xff]  ;;  %v48_v10 = vld [vmem:[%s2413_s0 + $0x108] sm:$0xff]  ;;  %v17_v11 = vld [vmem:[%s2413_s0 + $0x10] sm:$0xff] }
   0x4   :  { %1374 = vmatprep.subr.bf16.mxu0 %v1373_v3  ;;  %1381 = vmatprep.subr.bf16.mxu1 %v1373_v3  ;;  %v83_v8 = vld [vmem:[%s2414_s1 + $0x20] sm:$0xff]  ;;  %v49_v12 = vld [vmem:[%s2413_s0 + $0x110] sm:$0xff]  ;;  %v18_v13 = vld [vmem:[%s2413_s0 + $0x18] sm:$0xff] }
   0x5   :  { %1376 = vmatpush3.bf16.msra.mxu0 %v1373_v3  ;;  %1384 = vmatpush3.bf16.msra.mxu1 %v1373_v3  ;;  %v50_v14 = vld [vmem:[%s2413_s0 + $0x118] sm:$0xff]  ;;  %v19_v15 = vld [vmem:[%s2413_s0 + $0x20] sm:$0xff]  ;;  %v20_v17 = vld [vmem:[%s2413_s0 + $0x28] sm:$0xff] }
   0x6   :  { %1378 = vmatprep.subr.bf16.mxu0 %v1377_v6  ;;  %1382 = vmatprep.subr.bf16.mxu1 %v1377_v6  ;;  %v51_v16 = vld [vmem:[%s2413_s0 + $0x120] sm:$0xff]  ;;  %v52_v18 = vld [vmem:[%s2413_s0 + $0x128] sm:$0xff]  ;;  %v21_v19 = vld [vmem:[%s2413_s0 + $0x30] sm:$0xff] }
   0x7   :  { %1325 = vmatprep.mubr.msk.f32.mxu1 %vm91_vm0, %v47_v7  ;;  %v53_v20 = vld [vmem:[%s2413_s0 + $0x130] sm:$0xff]  ;;  %v22_v21 = vld [vmem:[%s2413_s0 + $0x38] sm:$0xff]  ;;  %v23_v23 = vld [vmem:[%s2413_s0 + $0x40] sm:$0xff] }
   0x8   :  { %v54_v22 = vld [vmem:[%s2413_s0 + $0x138] sm:$0xff]  ;;  %v55_v24 = vld [vmem:[%s2413_s0 + $0x140] sm:$0xff] }
   0x9   :  { %1380 = vmatpush3.bf16.msra.mxu0 %v1377_v6  ;;  %1385 = vmatpush3.bf16.msra.mxu1 %v1377_v6 }
   0xa   :  { %1275 = vmatprep.subr.mxu0 %v83_v8  ;;  %1383 = vmatprep.subr.mxu1 %v83_v8 }
   0xd   :  { %1276 = vmatpush3.msra.mxu0 %v83_v8  ;;  %1386 = vmatpush3.msra.mxu1 %v83_v8 }
   0xe   :  { %1278 = vmatmul.mubr.msk.f32.vlgmr.msra.gmra.mrb[0].mxu0 %vm91_vm0, %v16_v9  ;;  %1326 = vmatmul.mubr.msk.f32.vlgmr.msra.gmra.mrb[0].mxu1 %vm91_vm0, %v48_v10 }
   0xf   :  { %1280 = vmatprep.mubr.msk.f32.mxu0 %vm91_vm0, %v17_v11  ;;  %1328 = vmatprep.mubr.msk.f32.mxu1 %vm91_vm0, %v49_v12 }
  0x12   :  { %1281 = vmatmul.mubr.msk.f32.gmra.mrb[2].mxu0 %vm91_vm0, %v18_v13  ;;  %1329 = vmatmul.mubr.msk.f32.gmra.mrb[2].mxu1 %vm91_vm0, %v50_v14 }
  0x13   :  { %1283 = vmatprep.mubr.msk.f32.mxu0 %vm91_vm0, %v19_v15  ;;  %1331 = vmatprep.mubr.msk.f32.mxu1 %vm91_vm0, %v51_v16 }
  0x16   :  { %1284 = vmatmul.mubr.msk.f32.gmra.mrb[4].mxu0 %vm91_vm0, %v20_v17  ;;  %1332 = vmatmul.mubr.msk.f32.gmra.mrb[4].mxu1 %vm91_vm0, %v52_v18 }
  0x17   :  { %1286 = vmatprep.mubr.msk.f32.mxu0 %vm91_vm0, %v21_v19  ;;  %1334 = vmatprep.mubr.msk.f32.mxu1 %vm91_vm0, %v53_v20 }
  0x18   :  { %8 = vsyncpa [#allocation3], 0  ;;  %v24_v25 = vld [vmem:[%s2413_s0 + $0x48] sm:$0xff]  ;;  %v25_v27 = vld [vmem:[%s2413_s0 + $0x50] sm:$0xff] }
  0x19   :  { %v56_v26 = vld [vmem:[%s2413_s0 + $0x148] sm:$0xff]  ;;  %v57_v28 = vld [vmem:[%s2413_s0 + $0x150] sm:$0xff]  ;;  %v26_v29 = vld [vmem:[%s2413_s0 + $0x58] sm:$0xff] }
  0x1a   :  { %1287 = vmatmul.mubr.msk.f32.gmra.mrb[6].mxu0 %vm91_vm0, %v22_v21  ;;  %1335 = vmatmul.mubr.msk.f32.gmra.mrb[6].mxu1 %vm91_vm0, %v54_v22  ;;  %v58_v30 = vld [vmem:[%s2413_s0 + $0x158] sm:$0xff]  ;;  %v27_v31 = vld [vmem:[%s2413_s0 + $0x60] sm:$0xff]  ;;  %v28_v33 = vld [vmem:[%s2413_s0 + $0x68] sm:$0xff] }
  0x1b   :  { %1289 = vmatprep.mubr.msk.f32.mxu0 %vm91_vm0, %v23_v23  ;;  %1337 = vmatprep.mubr.msk.f32.mxu1 %vm91_vm0, %v55_v24  ;;  %v59_v32 = vld [vmem:[%s2413_s0 + $0x160] sm:$0xff]  ;;  %v60_v34 = vld [vmem:[%s2413_s0 + $0x168] sm:$0xff]  ;;  %v29_v35 = vld [vmem:[%s2413_s0 + $0x70] sm:$0xff] }
  0x1c   :  { %v61_v36 = vld [vmem:[%s2413_s0 + $0x170] sm:$0xff]  ;;  %v30_v37 = vld [vmem:[%s2413_s0 + $0x78] sm:$0xff]  ;;  %v31_v39 = vld [vmem:[%s2413_s0 + $0x80] sm:$0xff] }
  0x1d   :  { %v62_v38 = vld [vmem:[%s2413_s0 + $0x178] sm:$0xff]  ;;  %v63_v40 = vld [vmem:[%s2413_s0 + $0x180] sm:$0xff]  ;;  %v32_v41 = vld [vmem:[%s2413_s0 + $0x88] sm:$0xff] }
  0x1e   :  { %1290 = vmatmul.mubr.msk.f32.gmra.mrb[8].mxu0 %vm91_vm0, %v24_v25  ;;  %1338 = vmatmul.mubr.msk.f32.gmra.mrb[8].mxu1 %vm91_vm0, %v56_v26  ;;  %v64_v42 = vld [vmem:[%s2413_s0 + $0x188] sm:$0xff]  ;;  %v33_v43 = vld [vmem:[%s2413_s0 + $0x90] sm:$0xff]  ;;  %v34_v45 = vld [vmem:[%s2413_s0 + $0x98] sm:$0xff] }
  0x1f   :  { %1292 = vmatprep.mubr.msk.f32.mxu0 %vm91_vm0, %v25_v27  ;;  %1340 = vmatprep.mubr.msk.f32.mxu1 %vm91_vm0, %v57_v28  ;;  %v65_v44 = vld [vmem:[%s2413_s0 + $0x190] sm:$0xff]  ;;  %v66_v46 = vld [vmem:[%s2413_s0 + $0x198] sm:$0xff]  ;;  %v35_v47 = vld [vmem:[%s2413_s0 + $0xa0] sm:$0xff] }
  0x20   :  { %v67_v48 = vld [vmem:[%s2413_s0 + $0x1a0] sm:$0xff]  ;;  %v36_v49 = vld [vmem:[%s2413_s0 + $0xa8] sm:$0xff]  ;;  %v37_v51 = vld [vmem:[%s2413_s0 + $0xb0] sm:$0xff] }
  0x21   :  { %v68_v50 = vld [vmem:[%s2413_s0 + $0x1a8] sm:$0xff]  ;;  %v69_v52 = vld [vmem:[%s2413_s0 + $0x1b0] sm:$0xff]  ;;  %v38_v53 = vld [vmem:[%s2413_s0 + $0xb8] sm:$0xff] }
  0x22   :  { %1293 = vmatmul.mubr.msk.f32.gmra.mrb[10].mxu0 %vm91_vm0, %v26_v29  ;;  %1341 = vmatmul.mubr.msk.f32.gmra.mrb[10].mxu1 %vm91_vm0, %v58_v30  ;;  %v70_v54 = vld [vmem:[%s2413_s0 + $0x1b8] sm:$0xff]  ;;  %v39_v55 = vld [vmem:[%s2413_s0 + $0xc0] sm:$0xff]  ;;  %v40_v57 = vld [vmem:[%s2413_s0 + $0xc8] sm:$0xff] }
  0x23   :  { %1295 = vmatprep.mubr.msk.f32.mxu0 %vm91_vm0, %v27_v31  ;;  %1343 = vmatprep.mubr.msk.f32.mxu1 %vm91_vm0, %v59_v32  ;;  %v71_v56 = vld [vmem:[%s2413_s0 + $0x1c0] sm:$0xff]  ;;  %v72_v58 = vld [vmem:[%s2413_s0 + $0x1c8] sm:$0xff]  ;;  %v41_v59 = vld [vmem:[%s2413_s0 + $0xd0] sm:$0xff] }
  0x24   :  { %v73_v60 = vld [vmem:[%s2413_s0 + $0x1d0] sm:$0xff]  ;;  %v42_v61 = vld [vmem:[%s2413_s0 + $0xd8] sm:$0xff]  ;;  %v43_v63 = vld [vmem:[%s2413_s0 + $0xe0] sm:$0xff] }
  0x25   :  { %v74_v62 = vld [vmem:[%s2413_s0 + $0x1d8] sm:$0xff]  ;;  %v75_v0 = vld [vmem:[%s2413_s0 + $0x1e0] sm:$0xff]  ;;  %v44_v1 = vld [vmem:[%s2413_s0 + $0xe8] sm:$0xff] }
  0x26   :  { %1296 = vmatmul.mubr.msk.f32.gmra.mrb[12].mxu0 %vm91_vm0, %v28_v33  ;;  %1344 = vmatmul.mubr.msk.f32.gmra.mrb[12].mxu1 %vm91_vm0, %v60_v34  ;;  %v76_v2 = vld [vmem:[%s2413_s0 + $0x1e8] sm:$0xff]  ;;  %v45_v3 = vld [vmem:[%s2413_s0 + $0xf0] sm:$0xff]  ;;  %v46_v5 = vld [vmem:[%s2413_s0 + $0xf8] sm:$0xff] }
  0x27   :  { %1298 = vmatprep.mubr.msk.f32.mxu0 %vm91_vm0, %v29_v35  ;;  %1346 = vmatprep.mubr.msk.f32.mxu1 %vm91_vm0, %v61_v36  ;;  %v77_v4 = vld [vmem:[%s2413_s0 + $0x1f0] sm:$0xff]  ;;  %v78_v6 = vld [vmem:[%s2413_s0 + $0x1f8] sm:$0xff]  ;;  %v1968_v7 = vld [vmem:[%s2415_s2] ss:$0 sm:$0xff] }
  0x2a   :  { %1299 = vmatmul.mubr.msk.f32.gmra.mrb[14].mxu0 %vm91_vm0, %v30_v37  ;;  %1347 = vmatmul.mubr.msk.f32.gmra.mrb[14].mxu1 %vm91_vm0, %v62_v38 }
  0x2b   :  { %1301 = vmatprep.mubr.msk.f32.mxu0 %vm91_vm0, %v31_v39  ;;  %1349 = vmatprep.mubr.msk.f32.mxu1 %vm91_vm0, %v63_v40 }
  0x2e   :  { %1302 = vmatmul.mubr.msk.f32.gmra.mrb[16].mxu0 %vm91_vm0, %v32_v41  ;;  %1350 = vmatmul.mubr.msk.f32.gmra.mrb[16].mxu1 %vm91_vm0, %v64_v42 }
  0x2f   :  { %1304 = vmatprep.mubr.msk.f32.mxu0 %vm91_vm0, %v33_v43  ;;  %1352 = vmatprep.mubr.msk.f32.mxu1 %vm91_vm0, %v65_v44 }
  0x32   :  { %1305 = vmatmul.mubr.msk.f32.gmra.mrb[18].mxu0 %vm91_vm0, %v34_v45  ;;  %1353 = vmatmul.mubr.msk.f32.gmra.mrb[18].mxu1 %vm91_vm0, %v66_v46 }
  0x33   :  { %1307 = vmatprep.mubr.msk.f32.mxu0 %vm91_vm0, %v35_v47  ;;  %1355 = vmatprep.mubr.msk.f32.mxu1 %vm91_vm0, %v67_v48 }
  0x36   :  { %1308 = vmatmul.mubr.msk.f32.gmra.mrb[20].mxu0 %vm91_vm0, %v36_v49  ;;  %1356 = vmatmul.mubr.msk.f32.gmra.mrb[20].mxu1 %vm91_vm0, %v68_v50 }
  0x37   :  { %1310 = vmatprep.mubr.msk.f32.mxu0 %vm91_vm0, %v37_v51  ;;  %1358 = vmatprep.mubr.msk.f32.mxu1 %vm91_vm0, %v69_v52 }
  0x3a   :  { %1311 = vmatmul.mubr.msk.f32.gmra.mrb[22].mxu0 %vm91_vm0, %v38_v53  ;;  %1359 = vmatmul.mubr.msk.f32.gmra.mrb[22].mxu1 %vm91_vm0, %v70_v54 }
  0x3b   :  { %1313 = vmatprep.mubr.msk.f32.mxu0 %vm91_vm0, %v39_v55  ;;  %1361 = vmatprep.mubr.msk.f32.mxu1 %vm91_vm0, %v71_v56 }
  0x3e   :  { %1314 = vmatmul.mubr.msk.f32.gmra.mrb[24].mxu0 %vm91_vm0, %v40_v57  ;;  %1362 = vmatmul.mubr.msk.f32.gmra.mrb[24].mxu1 %vm91_vm0, %v72_v58 }
  0x3f   :  { %1316 = vmatprep.mubr.msk.f32.mxu0 %vm91_vm0, %v41_v59  ;;  %1364 = vmatprep.mubr.msk.f32.mxu1 %vm91_vm0, %v73_v60 }
  0x42   :  { %1317 = vmatmul.mubr.msk.f32.gmra.mrb[26].mxu0 %vm91_vm0, %v42_v61  ;;  %1365 = vmatmul.mubr.msk.f32.gmra.mrb[26].mxu1 %vm91_vm0, %v74_v62 }
  0x43   :  { %1319 = vmatprep.mubr.msk.f32.mxu0 %vm91_vm0, %v43_v63  ;;  %1367 = vmatprep.mubr.msk.f32.mxu1 %vm91_vm0, %v75_v0 }
  0x46   :  { %1320 = vmatmul.mubr.msk.f32.gmra.mrb[28].mxu0 %vm91_vm0, %v44_v1  ;;  %1368 = vmatmul.mubr.msk.f32.gmra.mrb[28].mxu1 %vm91_vm0, %v76_v2 }
  0x47   :  { %1322 = vmatprep.mubr.msk.f32.mxu0 %vm91_vm0, %v45_v3  ;;  %1370 = vmatprep.mubr.msk.f32.mxu1 %vm91_vm0, %v77_v4 }
  0x4a   :  { %1323 = vmatmul.mubr.msk.f32.gmra.mrb[30].mxu0 %vm91_vm0, %v46_v5  ;;  %1371 = vmatmul.mubr.msk.f32.gmra.mrb[30].mxu1 %vm91_vm0, %v78_v6 }
  0xe1   :  { %v1279_v8 = vpop.f32.mrb[0].mxu0  ;;  %v1327_v9 = vpop.f32.mrb[0].mxu1 }
  0xe2   :  { %v1971_v10 = vadd.f32 %v1279_v8, %v1968_v7  ;;  %v1974_v11 = vadd.f32 %v1327_v9, %v1968_v7  ;;  %v350_v12 = vpop.f32.mrb[1].mxu0  ;;  %v510_v13 = vpop.f32.mrb[1].mxu1 }
  0xe3   :  { %v1977_v14 = vadd.f32 %v1968_v7, %v350_v12  ;;  %v1980_v15 = vadd.f32 %v1968_v7, %v510_v13 }
  0xe4   :  { %v670_v16 = vsub.f32 0.0, %v1971_v10  ;;  %v702_v17 = vsub.f32 0.0, %v1974_v11 }
  0xe5   :  { %v669_v18 = vsub.f32 0.0, %v1977_v14  ;;  %v701_v19 = vsub.f32 0.0, %v1980_v15  ;;  %v1282_v20 = vpop.f32.mrb[2].mxu0  ;;  %v1330_v21 = vpop.f32.mrb[2].mxu1 }
  0xe6   :  { %v735_v22 = vmul.f32 1.442695, %v670_v16  ;;  %v799_v23 = vmul.f32 1.442695, %v702_v17  ;;  %v1987_v24 = vadd.f32 %v1282_v20, %v1968_v7  ;;  %v1990_v25 = vadd.f32 %v1330_v21, %v1968_v7  ;;  %v360_v26 = vpop.f32.mrb[3].mxu0  ;;  %v520_v27 = vpop.f32.mrb[3].mxu1 }
  0xe7   :  { %v733_v28 = vmul.f32 1.442695, %v669_v18  ;;  %v797_v29 = vmul.f32 1.442695, %v701_v19  ;;  %v1993_v30 = vadd.f32 %v1968_v7, %v360_v26  ;;  %v1996_v31 = vadd.f32 %v1968_v7, %v520_v27 }
  0xe8   :  { %1390 = vpow2.f32 %v735_v22  ;;  %v672_v32 = vsub.f32 0.0, %v1987_v24  ;;  %v704_v33 = vsub.f32 0.0, %v1990_v25 }
  0xe9   :  { %1392 = vpow2.f32 %v799_v23  ;;  %v671_v34 = vsub.f32 0.0, %v1993_v30  ;;  %v703_v35 = vsub.f32 0.0, %v1996_v31  ;;  %v1285_v36 = vpop.f32.mrb[4].mxu0  ;;  %v1333_v37 = vpop.f32.mrb[4].mxu1 }
  0xea   :  { %1394 = vpow2.f32 %v733_v28  ;;  %v739_v38 = vmul.f32 1.442695, %v672_v32  ;;  %v803_v39 = vmul.f32 1.442695, %v704_v33  ;;  %v2003_v40 = vadd.f32 %v1285_v36, %v1968_v7  ;;  %v370_v41 = vpop.f32.mrb[5].mxu0  ;;  %v530_v42 = vpop.f32.mrb[5].mxu1 }
  0xeb   :  { %1396 = vpow2.f32 %v797_v29  ;;  %v737_v43 = vmul.f32 1.442695, %v671_v34  ;;  %v801_v44 = vmul.f32 1.442695, %v703_v35  ;;  %v2006_v45 = vadd.f32 %v1333_v37, %v1968_v7 }
  0xec   :  { %1398 = vpow2.f32 %v739_v38  ;;  %v674_v46 = vsub.f32 0.0, %v2003_v40  ;;  %v2010_v47 = vadd.f32 %v1968_v7, %v370_v41  ;;  %v2013_v48 = vadd.f32 %v1968_v7, %v530_v42 }
  0xed   :  { %1400 = vpow2.f32 %v803_v39  ;;  %v706_v49 = vsub.f32 0.0, %v2006_v45  ;;  %v1288_v50 = vpop.f32.mrb[6].mxu0  ;;  %v1336_v51 = vpop.f32.mrb[6].mxu1 }
  0xee   :  { %1402 = vpow2.f32 %v737_v43  ;;  %v743_v52 = vmul.f32 1.442695, %v674_v46  ;;  %v673_v53 = vsub.f32 0.0, %v2010_v47  ;;  %v705_v54 = vsub.f32 0.0, %v2013_v48  ;;  %v380_v55 = vpop.f32.mrb[7].mxu0  ;;  %v540_v56 = vpop.f32.mrb[7].mxu1 }
  0xef   :  { %1404 = vpow2.f32 %v801_v44  ;;  %v807_v57 = vmul.f32 1.442695, %v706_v49  ;;  %v2019_v60 = vadd.f32 %v1288_v50, %v1968_v7  ;;  %v2022_v0 = vadd.f32 %v1336_v51, %v1968_v7 }
  0xf0   :  { %1406 = vpow2.f32 %v743_v52  ;;  %v741_v58 = vmul.f32 1.442695, %v673_v53  ;;  %v805_v59 = vmul.f32 1.442695, %v705_v54  ;;  %v2025_v8 = vadd.f32 %v1968_v7, %v380_v55 }
  0xf1   :  { %1408 = vpow2.f32 %v807_v57  ;;  %v1291_v61 = vpop.f32.mrb[8].mxu0  ;;  %v1339_v62 = vpop.f32.mrb[8].mxu1  ;;  %v676_v13 = vsub.f32 0.0, %v2019_v60  ;;  %v708_v20 = vsub.f32 0.0, %v2022_v0  ;;  %v2030_v21 = vadd.f32 %v1968_v7, %v540_v56 }
  0xf2   :  { %v1391_v63 = vpop.eup %1390  ;;  %1410 = vpow2.f32 %v741_v58  ;;  %v390_v1 = vpop.f32.mrb[9].mxu0  ;;  %v2033_v27 = vadd.f32 %v1291_v61, %v1968_v7  ;;  %v675_v33 = vsub.f32 0.0, %v2025_v8  ;;  %v2037_v37 = vadd.f32 %v1339_v62, %v1968_v7 }
  0xf3   :  { %v550_v2 = vpop.f32.mrb[9].mxu1  ;;  %v1393_v3 = vpop.eup %1392  ;;  %v862_v4 = vadd.f32 1.0, %v1391_v63  ;;  %1412 = vpow2.f32 %v805_v59  ;;  %v747_v36 = vmul.f32 1.442695, %v676_v13  ;;  %v811_v43 = vmul.f32 1.442695, %v708_v20 }
  0xf4   :  { %v1395_v5 = vpop.eup %1394  ;;  %v894_v6 = vadd.f32 1.0, %v1393_v3  ;;  %v707_v44 = vsub.f32 0.0, %v2030_v21  ;;  %v678_v52 = vsub.f32 0.0, %v2033_v27  ;;  %v2048_v53 = vadd.f32 %v1968_v7, %v390_v1 }
  0xf5   :  { %v1397_v9 = vpop.eup %1396  ;;  %1414 = vrcp.f32 %v862_v4  ;;  %v861_v12 = vadd.f32 1.0, %v1395_v5  ;;  %v1294_v16 = vpop.f32.mrb[10].mxu0  ;;  %v745_v56 = vmul.f32 1.442695, %v675_v33  ;;  %v2051_v57 = vadd.f32 %v1968_v7, %v550_v2 }
  0xf6   :  { %v1342_v17 = vpop.f32.mrb[10].mxu1  ;;  %v1399_v18 = vpop.eup %1398  ;;  %1416 = vrcp.f32 %v894_v6  ;;  %v893_v19 = vadd.f32 1.0, %v1397_v9  ;;  %v710_v61 = vsub.f32 0.0, %v2037_v37  ;;  %v2055_v62 = vadd.f32 %v1294_v16, %v1968_v7 }
  0xf7   :  { %v400_v22 = vpop.f32.mrb[11].mxu0  ;;  %v1401_v23 = vpop.eup %1400  ;;  %1418 = vrcp.f32 %v861_v12  ;;  %v864_v26 = vadd.f32 1.0, %v1399_v18  ;;  %v809_v4 = vmul.f32 1.442695, %v707_v44  ;;  %v2062_v5 = vadd.f32 %v1342_v17, %v1968_v7 }
  0xf8   :  { %v560_v28 = vpop.f32.mrb[11].mxu1  ;;  %v1403_v29 = vpop.eup %1402  ;;  %1420 = vrcp.f32 %v893_v19  ;;  %v896_v32 = vadd.f32 1.0, %v1401_v23  ;;  %v751_v12 = vmul.f32 1.442695, %v678_v52  ;;  %v677_v13 = vsub.f32 0.0, %v2048_v53 }
  0xf9   :  { %v1405_v34 = vpop.eup %1404  ;;  %1422 = vrcp.f32 %v864_v26  ;;  %v863_v35 = vadd.f32 1.0, %v1403_v29  ;;  %v1297_v38 = vpop.f32.mrb[12].mxu0  ;;  %v2070_v16 = vadd.f32 %v1968_v7, %v400_v22  ;;  %v709_v20 = vsub.f32 0.0, %v2051_v57 }
  0xfa   :  { %v2039_v39 = vpop.f32.mrb[12].mxu1  ;;  %v1407_v41 = vpop.eup %1406  ;;  %1424 = vrcp.f32 %v896_v32  ;;  %v895_v42 = vadd.f32 1.0, %v1405_v34  ;;  %v2075_v17 = vadd.f32 %v1968_v7, %v560_v28  ;;  %v680_v29 = vsub.f32 0.0, %v2055_v62 }
  0xfb   :  { %v2042_v46 = vpop.f32.mrb[13].mxu0  ;;  %v2044_v49 = vpop.f32.mrb[13].mxu1  ;;  %1426 = vrcp.f32 %v863_v35  ;;  %v866_v51 = vadd.f32 1.0, %v1407_v41  ;;  %v2080_v32 = vadd.f32 %v1297_v38, %v1968_v7  ;;  %v815_v28 = vmul.f32 1.442695, %v710_v61 }
  0xfc   :  { %v1409_v50 = vpop.eup %1408  ;;  %1428 = vrcp.f32 %v895_v42  ;;  %v712_v35 = vsub.f32 0.0, %v2062_v5  ;;  %v749_v42 = vmul.f32 1.442695, %v677_v13  ;;  %v679_v44 = vsub.f32 0.0, %v2070_v16 }
  0xfd   :  { %v1411_v54 = vpop.eup %1410  ;;  %v898_v55 = vadd.f32 1.0, %v1409_v50  ;;  %1430 = vrcp.f32 %v866_v51  ;;  %v2057_v63 = vpop.f32.mrb[14].mxu0  ;;  %v711_v51 = vsub.f32 0.0, %v2075_v17 }
  0xfe   :  { %v1413_v58 = vpop.eup %1412  ;;  %v865_v59 = vadd.f32 1.0, %v1411_v54  ;;  %v2059_v3 = vpop.f32.mrb[14].mxu1  ;;  %v819_v61 = vmul.f32 1.442695, %v712_v35 }
  0xff   :  { %1432 = vrcp.f32 %v898_v55  ;;  %v897_v1 = vadd.f32 1.0, %v1413_v58  ;;  %v2064_v2 = vpop.f32.mrb[15].mxu0  ;;  %v2066_v6 = vpop.f32.mrb[15].mxu1  ;;  %v755_v55 = vmul.f32 1.442695, %v680_v29 }
 0x100   :  { %v1415_v9 = vpop.eup %1414  ;;  %1434 = vrcp.f32 %v865_v59 }
 0x101   :  { %v1417_v18 = vpop.eup %1416  ;;  %v990_v19 = vmul.f32 %v1415_v9, %v1971_v10  ;;  %1436 = vrcp.f32 %v897_v1  ;;  %v2082_v22 = vpop.f32.mrb[16].mxu0 }
 0x102   :  { %v1419_v23 = vpop.eup %1418  ;;  %v1022_v26 = vmul.f32 %v1417_v18, %v1974_v11  ;;  %1438 = vpow2.f32 %v747_v36  ;;  %v2084_v33 = vpop.f32.mrb[16].mxu1 }
 0x103   :  { %v1421_v10 = vpop.eup %1420  ;;  %1054 = vst [vmem:[#allocation2 + $0x8] sm:$0xff] %v990_v19  ;;  %v989_v34 = vmul.f32 %v1419_v23, %v1977_v14  ;;  %1440 = vpow2.f32 %v811_v43  ;;  %v2088_v41 = vpop.f32.mrb[17].mxu0  ;;  %v813_v43 = vmul.f32 1.442695, %v709_v20  ;;  %v817_v19 = vmul.f32 1.442695, %v711_v51 }
 0x104   :  { %v2090_v11 = vpop.f32.mrb[17].mxu1  ;;  %v1423_v36 = vpop.eup %1422  ;;  %1086 = vst [vmem:[#allocation2 + $0x108] sm:$0xff] %v1022_v26  ;;  %v1021_v38 = vmul.f32 %v1421_v10, %v1980_v15  ;;  %1442 = vpow2.f32 %v745_v56  ;;  %v682_v15 = vsub.f32 0.0, %v2080_v32 }
 0x105   :  { %v1425_v50 = vpop.eup %1424  ;;  %1053 = vst [vmem:[#allocation2] sm:$0xff] %v989_v34  ;;  %v992_v14 = vmul.f32 %v1423_v36, %v1987_v24  ;;  %1444 = vpow2.f32 %v809_v4  ;;  %v2098_v56 = vpop.f32.mrb[18].mxu0 }
 0x106   :  { %v1427_v52 = vpop.eup %1426  ;;  %1085 = vst [vmem:[#allocation2 + $0x100] sm:$0xff] %v1021_v38  ;;  %v1024_v54 = vmul.f32 %v1425_v50, %v1990_v25  ;;  %1446 = vpow2.f32 %v751_v12  ;;  %v2100_v58 = vpop.f32.mrb[18].mxu1  ;;  %v753_v12 = vmul.f32 1.442695, %v679_v44  ;;  %v759_v23 = vmul.f32 1.442695, %v682_v15 }
 0x107   :  { %v1429_v59 = vpop.eup %1428  ;;  %1056 = vst [vmem:[#allocation2 + $0x18] sm:$0xff] %v992_v14  ;;  %v991_v24 = vmul.f32 %v1427_v52, %v1993_v30  ;;  %1448 = vpow2.f32 %v815_v28  ;;  %v2103_v1 = vpop.f32.mrb[19].mxu0 }
 0x108   :  { %v2105_v4 = vpop.f32.mrb[19].mxu1  ;;  %v1431_v9 = vpop.eup %1430  ;;  %1088 = vst [vmem:[#allocation2 + $0x118] sm:$0xff] %v1024_v54  ;;  %v1023_v25 = vmul.f32 %v1429_v59, %v1996_v31  ;;  %1450 = vpow2.f32 %v749_v42 }
 0x109   :  { %v1433_v13 = vpop.eup %1432  ;;  %1055 = vst [vmem:[#allocation2 + $0x10] sm:$0xff] %v991_v24  ;;  %v994_v18 = vmul.f32 %v1431_v9, %v2003_v40  ;;  %1452 = vpow2.f32 %v813_v43  ;;  %v2110_v26 = vpop.f32.mrb[20].mxu0  ;;  %v2134_v43 = vadd.f32 %v1968_v7, %v2044_v49  ;;  %v2148_v49 = vadd.f32 %v2059_v3, %v1968_v7 }
 0x10a   :  { %v1435_v20 = vpop.eup %1434  ;;  %1087 = vst [vmem:[#allocation2 + $0x110] sm:$0xff] %v1023_v25  ;;  %v1026_v30 = vmul.f32 %v1433_v13, %v2006_v45  ;;  %1454 = vpow2.f32 %v755_v55  ;;  %v2112_v29 = vpop.f32.mrb[20].mxu1  ;;  %v2122_v45 = vadd.f32 %v2039_v39, %v1968_v7  ;;  %v2141_v55 = vadd.f32 %v2057_v63, %v1968_v7 }
 0x10b   :  { %v1437_v10 = vpop.eup %1436  ;;  %1058 = vst [vmem:[#allocation2 + $0x28] sm:$0xff] %v994_v18  ;;  %v993_v31 = vmul.f32 %v1435_v20, %v2010_v47  ;;  %1456 = vpow2.f32 %v819_v61  ;;  %v2115_v34 = vpop.f32.mrb[21].mxu0  ;;  %v2126_v47 = vadd.f32 %v1968_v7, %v2042_v46  ;;  %v713_v20 = vsub.f32 0.0, %v2134_v43 }
 0x10c   :  { %v2117_v40 = vpop.f32.mrb[21].mxu1  ;;  %v1439_v28 = vpop.eup %1438  ;;  %1090 = vst [vmem:[#allocation2 + $0x128] sm:$0xff] %v1026_v30  ;;  %v1025_v35 = vmul.f32 %v1437_v10, %v2013_v48  ;;  %1458 = vpow2.f32 %v753_v12  ;;  %v714_v54 = vsub.f32 0.0, %v2122_v45  ;;  %v2152_v12 = vadd.f32 %v1968_v7, %v2064_v2 }
 0x10d   :  { %v1441_v36 = vpop.eup %1440  ;;  %1057 = vst [vmem:[#allocation2 + $0x20] sm:$0xff] %v993_v31  ;;  %v868_v38 = vadd.f32 1.0, %v1439_v28  ;;  %1460 = vpow2.f32 %v817_v19  ;;  %v2128_v50 = vpop.f32.mrb[22].mxu0  ;;  %v681_v61 = vsub.f32 0.0, %v2126_v47  ;;  %v684_v2 = vsub.f32 0.0, %v2141_v55 }
 0x10e   :  { %v1443_v42 = vpop.eup %1442  ;;  %1089 = vst [vmem:[#allocation2 + $0x120] sm:$0xff] %v1025_v35  ;;  %v900_v44 = vadd.f32 1.0, %v1441_v36  ;;  %1462 = vpow2.f32 %v759_v23  ;;  %v2130_v48 = vpop.f32.mrb[22].mxu1  ;;  %v823_v31 = vmul.f32 1.442695, %v714_v54 }
 0x10f   :  { %v1445_v14 = vpop.eup %1444  ;;  %1464 = vrcp.f32 %v868_v38  ;;  %v867_v39 = vadd.f32 1.0, %v1443_v42  ;;  %v2136_v51 = vpop.f32.mrb[23].mxu0  ;;  %v757_v36 = vmul.f32 1.442695, %v681_v61  ;;  %v716_v38 = vsub.f32 0.0, %v2148_v49 }
 0x110   :  { %v1447_v52 = vpop.eup %1446  ;;  %1466 = vrcp.f32 %v900_v44  ;;  %v899_v46 = vadd.f32 1.0, %v1445_v14  ;;  %v2143_v15 = vpop.f32.mrb[23].mxu1  ;;  %v683_v14 = vsub.f32 0.0, %v2152_v12 }
 0x111   :  { %v1449_v59 = vpop.eup %1448  ;;  %1468 = vrcp.f32 %v867_v39  ;;  %v870_v24 = vadd.f32 1.0, %v1447_v52  ;;  %v2154_v63 = vpop.f32.mrb[24].mxu0  ;;  %v2168_v39 = vadd.f32 %v1968_v7, %v2066_v6  ;;  %v2182_v6 = vadd.f32 %v2084_v33, %v1968_v7 }
 0x112   :  { %v1451_v9 = vpop.eup %1450  ;;  %1470 = vrcp.f32 %v899_v46  ;;  %v902_v25 = vadd.f32 1.0, %v1449_v59  ;;  %v2156_v13 = vpop.f32.mrb[24].mxu1  ;;  %v821_v59 = vmul.f32 1.442695, %v713_v20  ;;  %v2194_v33 = vadd.f32 %v1968_v7, %v2090_v11 }
 0x113   :  { %v1453_v18 = vpop.eup %1452  ;;  %1472 = vrcp.f32 %v870_v24  ;;  %v869_v19 = vadd.f32 1.0, %v1451_v9  ;;  %v2159_v30 = vpop.f32.mrb[25].mxu0  ;;  %v2174_v24 = vadd.f32 %v2082_v22, %v1968_v7  ;;  %v2188_v22 = vadd.f32 %v1968_v7, %v2088_v41 }
 0x114   :  { %v2161_v3 = vpop.f32.mrb[25].mxu1  ;;  %v1455_v23 = vpop.eup %1454  ;;  %1474 = vrcp.f32 %v902_v25  ;;  %v901_v10 = vadd.f32 1.0, %v1453_v18 }
 0x115   :  { %v1457_v28 = vpop.eup %1456  ;;  %1476 = vrcp.f32 %v869_v19  ;;  %v872_v35 = vadd.f32 1.0, %v1455_v23  ;;  %v2170_v52 = vpop.f32.mrb[26].mxu0  ;;  %v763_v19 = vmul.f32 1.442695, %v684_v2  ;;  %v715_v2 = vsub.f32 0.0, %v2168_v39 }
 0x116   :  { %v1459_v42 = vpop.eup %1458  ;;  %1478 = vrcp.f32 %v901_v10  ;;  %v904_v44 = vadd.f32 1.0, %v1457_v28  ;;  %v2176_v61 = vpop.f32.mrb[26].mxu1  ;;  %v827_v28 = vmul.f32 1.442695, %v716_v38  ;;  %v686_v41 = vsub.f32 0.0, %v2174_v24 }
 0x117   :  { %v1461_v46 = vpop.eup %1460  ;;  %1480 = vrcp.f32 %v872_v35  ;;  %v871_v54 = vadd.f32 1.0, %v1459_v42  ;;  %v2178_v9 = vpop.f32.mrb[27].mxu0 }
 0x118   :  { %v1463_v25 = vpop.eup %1462  ;;  %1482 = vrcp.f32 %v904_v44  ;;  %v903_v18 = vadd.f32 1.0, %v1461_v46  ;;  %v2184_v23 = vpop.f32.mrb[27].mxu1 }
 0x119   :  { %v1465_v10 = vpop.eup %1464  ;;  %1484 = vrcp.f32 %v871_v54  ;;  %v874_v20 = vadd.f32 1.0, %v1463_v25  ;;  %v2196_v44 = vpop.f32.mrb[28].mxu0 }
 0x11a   :  { %v1467_v35 = vpop.eup %1466  ;;  %v996_v42 = vmul.f32 %v1465_v10, %v2019_v60  ;;  %1486 = vrcp.f32 %v903_v18  ;;  %2417 = vst [vmem:[#allocation5_spill] sm:$0xff] %v2196_v44  ;;  %v2198_v46 = vpop.f32.mrb[28].mxu1  ;;  %v2204_v60 = vadd.f32 %v2098_v56, %v1968_v7 }
 0x11b   :  { %2418 = vst [vmem:[#allocation6_spill] sm:$0xff] %v2198_v46  ;;  %v1469_v54 = vpop.eup %1468  ;;  %v1028_v38 = vmul.f32 %v1467_v35, %v2022_v0  ;;  %1488 = vrcp.f32 %v874_v20  ;;  %v2206_v25 = vpop.f32.mrb[29].mxu0  ;;  %v718_v46 = vsub.f32 0.0, %v2182_v6  ;;  %v2214_v0 = vadd.f32 %v2100_v58, %v1968_v7 }
 0x11c   :  { %2419 = vst [vmem:[#allocation7_spill] sm:$0xff] %v2206_v25  ;;  %v2208_v18 = vpop.f32.mrb[29].mxu1  ;;  %v1471_v11 = vpop.eup %1470  ;;  %1060 = vst [vmem:[#allocation2 + $0x38] sm:$0xff] %v996_v42  ;;  %v995_v10 = vmul.f32 %v1469_v54, %v2025_v8  ;;  %1490 = vpow2.f32 %v823_v31  ;;  %v761_v35 = vmul.f32 1.442695, %v683_v14  ;;  %v685_v25 = vsub.f32 0.0, %v2188_v22 }
 0x11d   :  { %2420 = vst [vmem:[#allocation8_spill] sm:$0xff] %v2208_v18  ;;  %v1473_v20 = vpop.eup %1472  ;;  %1092 = vst [vmem:[#allocation2 + $0x138] sm:$0xff] %v1028_v38  ;;  %v1027_v56 = vmul.f32 %v1471_v11, %v2030_v21  ;;  %1492 = vpow2.f32 %v757_v36  ;;  %v825_v8 = vmul.f32 1.442695, %v715_v2  ;;  %v717_v31 = vsub.f32 0.0, %v2194_v33  ;;  %v2220_v54 = vpop.f32.mrb[30].mxu0 }
 0x11e   :  { %v1475_v18 = vpop.eup %1474  ;;  %1059 = vst [vmem:[#allocation2 + $0x30] sm:$0xff] %v995_v10  ;;  %v998_v42 = vmul.f32 %v1473_v20, %v2033_v27  ;;  %1494 = vpow2.f32 %v821_v59  ;;  %v2222_v58 = vpop.f32.mrb[30].mxu1  ;;  %v767_v36 = vmul.f32 1.442695, %v686_v41  ;;  %v688_v14 = vsub.f32 0.0, %v2204_v60 }
 0x11f   :  { %v1477_v44 = vpop.eup %1476  ;;  %1091 = vst [vmem:[#allocation2 + $0x130] sm:$0xff] %v1027_v56  ;;  %v1030_v21 = vmul.f32 %v1475_v18, %v2037_v37  ;;  %1496 = vpow2.f32 %v763_v19  ;;  %v2226_v38 = vpop.f32.mrb[31].mxu0  ;;  %v831_v2 = vmul.f32 1.442695, %v718_v46  ;;  %v720_v10 = vsub.f32 0.0, %v2214_v0 }
 0x120   :  { %v2228_v11 = vpop.f32.mrb[31].mxu1  ;;  %v1479_v27 = vpop.eup %1478  ;;  %1062 = vst [vmem:[#allocation2 + $0x48] sm:$0xff] %v998_v42  ;;  %v997_v59 = vmul.f32 %v1477_v44, %v2048_v53  ;;  %1498 = vpow2.f32 %v827_v28  ;;  %v765_v19 = vmul.f32 1.442695, %v685_v25  ;;  %v829_v56 = vmul.f32 1.442695, %v717_v31 }
 0x121   :  { %2421 = vst [vmem:[#allocation9_spill] sm:$0xff] %v2228_v11  ;;  %v1481_v20 = vpop.eup %1480  ;;  %1094 = vst [vmem:[#allocation2 + $0x148] sm:$0xff] %v1030_v21  ;;  %v1029_v37 = vmul.f32 %v1479_v27, %v2051_v57  ;;  %1500 = vpow2.f32 %v761_v35  ;;  %v771_v28 = vmul.f32 1.442695, %v688_v14  ;;  %v835_v57 = vmul.f32 1.442695, %v720_v10 }
 0x122   :  { %v1483_v41 = vpop.eup %1482  ;;  %1061 = vst [vmem:[#allocation2 + $0x40] sm:$0xff] %v997_v59  ;;  %v1000_v18 = vmul.f32 %v1481_v20, %v2055_v62  ;;  %1502 = vpow2.f32 %v825_v8  ;;  %v2252_v14 = vadd.f32 %v2112_v29, %v1968_v7  ;;  %v2257_v59 = vadd.f32 %v1968_v7, %v2115_v34 }
 0x123   :  { %v1485_v11 = vpop.eup %1484  ;;  %1093 = vst [vmem:[#allocation2 + $0x140] sm:$0xff] %v1029_v37  ;;  %v1032_v53 = vmul.f32 %v1483_v41, %v2062_v5  ;;  %1504 = vpow2.f32 %v767_v36  ;;  %v2240_v5 = vadd.f32 %v1968_v7, %v2103_v1 }
 0x124   :  { %v1487_v44 = vpop.eup %1486  ;;  %1064 = vst [vmem:[#allocation2 + $0x58] sm:$0xff] %v1000_v18  ;;  %v999_v46 = vmul.f32 %v1485_v11, %v2070_v16  ;;  %1506 = vpow2.f32 %v831_v2  ;;  %v2244_v16 = vadd.f32 %v1968_v7, %v2105_v4  ;;  %v722_v18 = vsub.f32 0.0, %v2252_v14 }
 0x125   :  { %v1489_v35 = vpop.eup %1488  ;;  %1096 = vst [vmem:[#allocation2 + $0x158] sm:$0xff] %v1032_v53  ;;  %v1031_v25 = vmul.f32 %v1487_v44, %v2075_v17  ;;  %1508 = vpow2.f32 %v765_v19  ;;  %v687_v4 = vsub.f32 0.0, %v2240_v5 }
 0x126   :  { %v1491_v62 = vpop.eup %1490  ;;  %1063 = vst [vmem:[#allocation2 + $0x50] sm:$0xff] %v999_v46  ;;  %v1002_v42 = vmul.f32 %v1489_v35, %v2080_v32  ;;  %1510 = vpow2.f32 %v829_v56  ;;  %v2248_v32 = vadd.f32 %v2110_v26, %v1968_v7  ;;  %v719_v10 = vsub.f32 0.0, %v2244_v16 }
 0x127   :  { %v1493_v8 = vpop.eup %1492  ;;  %1095 = vst [vmem:[#allocation2 + $0x150] sm:$0xff] %v1031_v25  ;;  %v906_v31 = vadd.f32 1.0, %v1491_v62  ;;  %1512 = vpow2.f32 %v771_v28  ;;  %v769_v34 = vmul.f32 1.442695, %v687_v4  ;;  %v689_v28 = vsub.f32 0.0, %v2257_v59 }
 0x128   :  { %v1495_v21 = vpop.eup %1494  ;;  %1066 = vst [vmem:[#allocation2 + $0x68] sm:$0xff] %v1002_v42  ;;  %v873_v17 = vadd.f32 1.0, %v1493_v8  ;;  %1514 = vpow2.f32 %v835_v57  ;;  %v690_v29 = vsub.f32 0.0, %v2248_v32  ;;  %v833_v57 = vmul.f32 1.442695, %v719_v10 }
 0x129   :  { %v1497_v36 = vpop.eup %1496  ;;  %1516 = vrcp.f32 %v906_v31  ;;  %v905_v1 = vadd.f32 1.0, %v1495_v21  ;;  %v2265_v35 = vadd.f32 %v1968_v7, %v2117_v40  ;;  %v2269_v8 = vadd.f32 %v2128_v50, %v1968_v7 }
 0x12a   :  { %v1499_v11 = vpop.eup %1498  ;;  %1518 = vrcp.f32 %v873_v17  ;;  %v876_v27 = vadd.f32 1.0, %v1497_v36  ;;  %v775_v42 = vmul.f32 1.442695, %v690_v29  ;;  %v839_v17 = vmul.f32 1.442695, %v722_v18 }
 0x12b   :  { %v1501_v2 = vpop.eup %1500  ;;  %1520 = vrcp.f32 %v905_v1  ;;  %v908_v26 = vadd.f32 1.0, %v1499_v11  ;;  %v2273_v36 = vadd.f32 %v2130_v48, %v1968_v7  ;;  %v773_v11 = vmul.f32 1.442695, %v689_v28 }
 0x12c   :  { %v1503_v20 = vpop.eup %1502  ;;  %1522 = vrcp.f32 %v876_v27  ;;  %v875_v37 = vadd.f32 1.0, %v1501_v2  ;;  %v2277_v27 = vadd.f32 %v1968_v7, %v2136_v51  ;;  %v721_v2 = vsub.f32 0.0, %v2265_v35 }
 0x12d   :  { %v1505_v19 = vpop.eup %1504  ;;  %1524 = vrcp.f32 %v908_v26  ;;  %v907_v41 = vadd.f32 1.0, %v1503_v20  ;;  %v2282_v26 = vadd.f32 %v1968_v7, %v2143_v15  ;;  %v692_v20 = vsub.f32 0.0, %v2269_v8 }
 0x12e   :  { %v1507_v56 = vpop.eup %1506  ;;  %1526 = vrcp.f32 %v875_v37  ;;  %v878_v53 = vadd.f32 1.0, %v1505_v19  ;;  %v2288_v37 = vadd.f32 %v2154_v63, %v1968_v7  ;;  %v724_v19 = vsub.f32 0.0, %v2273_v36 }
 0x12f   :  { %v1509_v44 = vpop.eup %1508  ;;  %1528 = vrcp.f32 %v907_v41  ;;  %v910_v46 = vadd.f32 1.0, %v1507_v56  ;;  %v2294_v15 = vadd.f32 %v2156_v13, %v1968_v7  ;;  %v691_v18 = vsub.f32 0.0, %v2277_v27 }
 0x130   :  { %v1511_v25 = vpop.eup %1510  ;;  %1530 = vrcp.f32 %v878_v53  ;;  %v877_v62 = vadd.f32 1.0, %v1509_v44  ;;  %v2300_v63 = vadd.f32 %v1968_v7, %v2159_v30  ;;  %v837_v53 = vmul.f32 1.442695, %v721_v2 }
 0x131   :  { %v1513_v31 = vpop.eup %1512  ;;  %1532 = vrcp.f32 %v910_v46  ;;  %v909_v21 = vadd.f32 1.0, %v1511_v25  ;;  %v723_v13 = vsub.f32 0.0, %v2282_v26  ;;  %v843_v25 = vmul.f32 1.442695, %v724_v19 }
 0x132   :  { %v1515_v1 = vpop.eup %1514  ;;  %1534 = vrcp.f32 %v877_v62  ;;  %v880_v40 = vadd.f32 1.0, %v1513_v31  ;;  %v777_v31 = vmul.f32 1.442695, %v691_v18 }
 0x133   :  { %v1517_v4 = vpop.eup %1516  ;;  %1536 = vrcp.f32 %v909_v21  ;;  %v912_v50 = vadd.f32 1.0, %v1515_v1  ;;  %v841_v1 = vmul.f32 1.442695, %v723_v13 }
 0x134   :  { %v1519_v10 = vpop.eup %1518  ;;  %v1034_v48 = vmul.f32 %v1517_v4, %v2122_v45  ;;  %1538 = vrcp.f32 %v880_v40 }
 0x135   :  { %v1521_v51 = vpop.eup %1520  ;;  %v1001_v29 = vmul.f32 %v1519_v10, %v2126_v47  ;;  %1540 = vrcp.f32 %v912_v50 }
 0x136   :  { %v1523_v41 = vpop.eup %1522  ;;  %1098 = vst [vmem:[#allocation2 + $0x168] sm:$0xff] %v1034_v48  ;;  %v1033_v45 = vmul.f32 %v1521_v51, %v2134_v43  ;;  %1542 = vpow2.f32 %v769_v34  ;;  %v779_v43 = vmul.f32 1.442695, %v692_v20  ;;  %v694_v34 = vsub.f32 0.0, %v2288_v37 }
 0x137   :  { %v1525_v56 = vpop.eup %1524  ;;  %1065 = vst [vmem:[#allocation2 + $0x60] sm:$0xff] %v1001_v29  ;;  %v1004_v47 = vmul.f32 %v1523_v41, %v2141_v55  ;;  %1544 = vpow2.f32 %v833_v57  ;;  %v726_v55 = vsub.f32 0.0, %v2294_v15 }
 0x138   :  { %v1527_v28 = vpop.eup %1526  ;;  %1097 = vst [vmem:[#allocation2 + $0x160] sm:$0xff] %v1033_v45  ;;  %v1036_v44 = vmul.f32 %v1525_v56, %v2148_v49  ;;  %1546 = vpow2.f32 %v775_v42  ;;  %v693_v49 = vsub.f32 0.0, %v2300_v63  ;;  %v2330_v45 = vadd.f32 %v1968_v7, %v2178_v9  ;;  %v1646_v9 = vld [vmem:[%s2415_s2] ss:$0 sm:$0xff]  ;;  %s1671_s2 = smov [#allocation2]  }
 0x139   :  { %v1529_v46 = vpop.eup %1528  ;;  %1068 = vst [vmem:[#allocation2 + $0x78] sm:$0xff] %v1004_v47  ;;  %v1003_v30 = vmul.f32 %v1527_v28, %v2152_v12  ;;  %1548 = vpow2.f32 %v839_v17  ;;  %v783_v17 = vmul.f32 1.442695, %v694_v34  ;;  %s1122_s13 = sshll.u32 %s1671_s2, 4  ;;  %s1123_s13 = int_to_ptr.vmem [resolvable:$true] %s1122_s13 }
 0x13a   :  { %v1531_v57 = vpop.eup %1530  ;;  %1100 = vst [vmem:[#allocation2 + $0x178] sm:$0xff] %v1036_v44  ;;  %v1035_v62 = vmul.f32 %v1529_v46, %v2168_v39  ;;  %1550 = vpow2.f32 %v773_v11  ;;  %v847_v11 = vmul.f32 1.442695, %v726_v55  ;;  %v2340_v46 = vadd.f32 %v1646_v9, %v2184_v23  ;;  %v2424_v23 = vld [vmem:[#allocation7_spill] sm:$0xff]  ;;  %s1647_s14 = scalar_lea.vmem %s1123_s13, 8192  ;;  %p1652_p1 = scmp.lt.s32.totalorder %s1123_s13, %s1123_s13 }
 0x13b   :  { %v1533_v42 = vpop.eup %1532  ;;  %1067 = vst [vmem:[#allocation2 + $0x70] sm:$0xff] %v1003_v30  ;;  %v1006_v21 = vmul.f32 %v1531_v57, %v2174_v24  ;;  %1552 = vpow2.f32 %v837_v53  ;;  %v781_v24 = vmul.f32 1.442695, %v693_v49  ;;  %v2422_v57 = vld [vmem:[#allocation5_spill] sm:$0xff]  ;;  %p1648_p0 = scmp.ne.s32.totalorder %s1123_s13, %s1647_s14  ;;  %p1653_p2 = scmp.lt.s32.totalorder %s1647_s14, %s1647_s14 }
 0x13c   :  { %v1535_v40 = vpop.eup %1534  ;;  %1099 = vst [vmem:[#allocation2 + $0x170] sm:$0xff] %v1035_v62  ;;  %v1038_v12 = vmul.f32 %v1533_v42, %v2182_v6  ;;  %1554 = vpow2.f32 %v779_v43  ;;  %v2343_v62 = vadd.f32 %v1646_v9, %v2422_v57 }
 0x13d   :  { %v1537_v4 = vpop.eup %1536  ;;  %1070 = vst [vmem:[#allocation2 + $0x88] sm:$0xff] %v1006_v21  ;;  %v1005_v39 = vmul.f32 %v1535_v40, %v2188_v22  ;;  %1556 = vpow2.f32 %v843_v25  ;;  %v2318_v22 = vadd.f32 %v1968_v7, %v2161_v3  ;;  %v2423_v21 = vld [vmem:[#allocation6_spill] sm:$0xff]  ;;  %p1654_p3 = por %p1653_p2, %p1652_p1 }
 0x13e   :  { %v1539_v50 = vpop.eup %1538  ;;  %1102 = vst [vmem:[#allocation2 + $0x188] sm:$0xff] %v1038_v12  ;;  %v1037_v2 = vmul.f32 %v1537_v4, %v2194_v33  ;;  %1558 = vpow2.f32 %v777_v31  ;;  %v2322_v33 = vadd.f32 %v2170_v52, %v1968_v7  ;;  %v2349_v4 = vadd.f32 %v1646_v9, %v2424_v23 }
 0x13f   :  { %v1541_v10 = vpop.eup %1540  ;;  %1069 = vst [vmem:[#allocation2 + $0x80] sm:$0xff] %v1005_v39  ;;  %v1008_v48 = vmul.f32 %v1539_v50, %v2204_v60  ;;  %1560 = vpow2.f32 %v841_v1  ;;  %v725_v52 = vsub.f32 0.0, %v2318_v22  ;;  %v2346_v1 = vadd.f32 %v1646_v9, %v2423_v21  ;;  %p1655_p4 = pnand %p1654_p3, %p1648_p0 }
 0x140   :  { %v1543_v6 = vpop.eup %1542  ;;  %1101 = vst [vmem:[#allocation2 + $0x180] sm:$0xff] %v1037_v2  ;;  %v1040_v20 = vmul.f32 %v1541_v10, %v2214_v0  ;;  %1562 = vpow2.f32 %v783_v17  ;;  %v2326_v0 = vadd.f32 %v2176_v61, %v1968_v7  ;;  %v696_v13 = vsub.f32 0.0, %v2322_v33 }
 0x141   :  { %v1545_v51 = vpop.eup %1544  ;;  %1072 = vst [vmem:[#allocation2 + $0x98] sm:$0xff] %v1008_v48  ;;  %v879_v29 = vadd.f32 1.0, %v1543_v6  ;;  %1564 = vpow2.f32 %v847_v11  ;;  %v695_v7 = vsub.f32 0.0, %v2330_v45  ;;  %v845_v55 = vmul.f32 1.442695, %v725_v52  ;;  %v2425_v6 = vld [vmem:[#allocation8_spill] sm:$0xff] }
 0x142   :  { %v1547_v19 = vpop.eup %1546  ;;  %1104 = vst [vmem:[#allocation2 + $0x198] sm:$0xff] %v1040_v20  ;;  %v911_v60 = vadd.f32 1.0, %v1545_v51  ;;  %1566 = vpow2.f32 %v781_v24  ;;  %v728_v44 = vsub.f32 0.0, %v2326_v0  ;;  %v787_v42 = vmul.f32 1.442695, %v696_v13 }
 0x143   :  { %v1549_v41 = vpop.eup %1548  ;;  %1568 = vrcp.f32 %v879_v29  ;;  %v882_v3 = vadd.f32 1.0, %v1547_v19  ;;  %v785_v50 = vmul.f32 1.442695, %v695_v7  ;;  %v727_v2 = vsub.f32 0.0, %v2340_v46 }
 0x144   :  { %v1551_v18 = vpop.eup %1550  ;;  %1570 = vrcp.f32 %v911_v60  ;;  %v914_v56 = vadd.f32 1.0, %v1549_v41  ;;  %v851_v17 = vmul.f32 1.442695, %v728_v44  ;;  %v698_v48 = vsub.f32 0.0, %v2343_v62 }
 0x145   :  { %v1553_v47 = vpop.eup %1552  ;;  %1572 = vrcp.f32 %v882_v3  ;;  %v881_v53 = vadd.f32 1.0, %v1551_v18  ;;  %v2354_v20 = vadd.f32 %v1646_v9, %v2425_v6  ;;  %v730_v19 = vsub.f32 0.0, %v2346_v1 }
 0x146   :  { %v1555_v28 = vpop.eup %1554  ;;  %1574 = vrcp.f32 %v914_v56  ;;  %v913_v61 = vadd.f32 1.0, %v1553_v47  ;;  %v2358_v60 = vadd.f32 %v1646_v9, %v2220_v54  ;;  %v697_v18 = vsub.f32 0.0, %v2349_v4 }
 0x147   :  { %v1557_v43 = vpop.eup %1556  ;;  %1576 = vrcp.f32 %v881_v53  ;;  %v884_v34 = vadd.f32 1.0, %v1555_v28  ;;  %v2363_v56 = vadd.f32 %v1646_v9, %v2222_v58  ;;  %v849_v53 = vmul.f32 1.442695, %v727_v2 }
 0x148   :  { %v1559_v30 = vpop.eup %1558  ;;  %1578 = vrcp.f32 %v913_v61  ;;  %v916_v25 = vadd.f32 1.0, %v1557_v43  ;;  %v2367_v13 = vadd.f32 %v1646_v9, %v2226_v38  ;;  %v2426_v61 = vld [vmem:[#allocation9_spill] sm:$0xff] }
 0x149   :  { %v1561_v31 = vpop.eup %1560  ;;  %1580 = vrcp.f32 %v884_v34  ;;  %v883_v49 = vadd.f32 1.0, %v1559_v30  ;;  %v2372_v44 = vadd.f32 %v1646_v9, %v2426_v61  ;;  %v700_v34 = vsub.f32 0.0, %v2358_v60 }
 0x14a   :  { %v1563_v40 = vpop.eup %1562  ;;  %1582 = vrcp.f32 %v916_v25  ;;  %v915_v12 = vadd.f32 1.0, %v1561_v31  ;;  %v732_v30 = vsub.f32 0.0, %v2363_v56 }
 0x14b   :  { %v1565_v39 = vpop.eup %1564  ;;  %1584 = vrcp.f32 %v883_v49  ;;  %v886_v11 = vadd.f32 1.0, %v1563_v40  ;;  %v795_v40 = vmul.f32 1.442695, %v700_v34 }
 0x14c   :  { %v1567_v24 = vpop.eup %1566  ;;  %1586 = vrcp.f32 %v915_v12  ;;  %v918_v10 = vadd.f32 1.0, %v1565_v39 }
 0x14d   :  { %v1569_v51 = vpop.eup %1568  ;;  %1588 = vrcp.f32 %v886_v11  ;;  %v885_v29 = vadd.f32 1.0, %v1567_v24 }
 0x14e   :  { %v1571_v41 = vpop.eup %1570  ;;  %v1007_v3 = vmul.f32 %v1569_v51, %v2240_v5  ;;  %1590 = vrcp.f32 %v918_v10  ;;  %v729_v5 = vsub.f32 0.0, %v2354_v20 }
 0x14f   :  { %v1573_v52 = vpop.eup %1572  ;;  %v1039_v47 = vmul.f32 %v1571_v41, %v2244_v16  ;;  %1592 = vrcp.f32 %v885_v29  ;;  %v791_v16 = vmul.f32 1.442695, %v698_v48 }
 0x150   :  { %v1575_v28 = vpop.eup %1574  ;;  %1071 = vst [vmem:[#allocation2 + $0x90] sm:$0xff] %v1007_v3  ;;  %v1010_v54 = vmul.f32 %v1573_v52, %v2248_v32  ;;  %1594 = vpow2.f32 %v845_v55  ;;  %v855_v32 = vmul.f32 1.442695, %v730_v19  ;;  %v789_v55 = vmul.f32 1.442695, %v697_v18 }
 0x151   :  { %v1577_v58 = vpop.eup %1576  ;;  %1103 = vst [vmem:[#allocation2 + $0x190] sm:$0xff] %v1039_v47  ;;  %v1042_v43 = vmul.f32 %v1575_v28, %v2252_v14  ;;  %1596 = vpow2.f32 %v787_v42  ;;  %v699_v14 = vsub.f32 0.0, %v2367_v13  ;;  %v853_v49 = vmul.f32 1.442695, %v729_v5 }
 0x152   :  { %v1579_v38 = vpop.eup %1578  ;;  %1074 = vst [vmem:[#allocation2 + $0xa8] sm:$0xff] %v1010_v54  ;;  %v1009_v7 = vmul.f32 %v1577_v58, %v2257_v59  ;;  %1598 = vpow2.f32 %v851_v17  ;;  %v731_v59 = vsub.f32 0.0, %v2372_v44  ;;  %v859_v17 = vmul.f32 1.442695, %v732_v30 }
 0x153   :  { %v1581_v25 = vpop.eup %1580  ;;  %1106 = vst [vmem:[#allocation2 + $0x1a8] sm:$0xff] %v1042_v43  ;;  %v1041_v9 = vmul.f32 %v1579_v38, %v2265_v35  ;;  %1600 = vpow2.f32 %v785_v50  ;;  %v793_v39 = vmul.f32 1.442695, %v699_v14 }
 0x154   :  { %v1583_v57 = vpop.eup %1582  ;;  %1073 = vst [vmem:[#allocation2 + $0xa0] sm:$0xff] %v1009_v7  ;;  %v1012_v31 = vmul.f32 %v1581_v25, %v2269_v8  ;;  %1602 = vpow2.f32 %v849_v53 }
 0x155   :  { %v1585_v42 = vpop.eup %1584  ;;  %1105 = vst [vmem:[#allocation2 + $0x1a0] sm:$0xff] %v1041_v9  ;;  %v1044_v21 = vmul.f32 %v1583_v57, %v2273_v36  ;;  %1604 = vpow2.f32 %v791_v16  ;;  %v857_v36 = vmul.f32 1.442695, %v731_v59 }
 0x156   :  { %v1587_v12 = vpop.eup %1586  ;;  %1076 = vst [vmem:[#allocation2 + $0xb8] sm:$0xff] %v1012_v31  ;;  %v1011_v35 = vmul.f32 %v1585_v42, %v2277_v27  ;;  %1606 = vpow2.f32 %v855_v32 }
 0x157   :  { %v1589_v23 = vpop.eup %1588  ;;  %1108 = vst [vmem:[#allocation2 + $0x1b8] sm:$0xff] %v1044_v21  ;;  %v1043_v8 = vmul.f32 %v1587_v12, %v2282_v26  ;;  %1608 = vpow2.f32 %v789_v55 }
 0x158   :  { %v1591_v11 = vpop.eup %1590  ;;  %1075 = vst [vmem:[#allocation2 + $0xb0] sm:$0xff] %v1011_v35  ;;  %v1014_v50 = vmul.f32 %v1589_v23, %v2288_v37  ;;  %1610 = vpow2.f32 %v853_v49 }
 0x159   :  { %v1593_v2 = vpop.eup %1592  ;;  %1107 = vst [vmem:[#allocation2 + $0x1b0] sm:$0xff] %v1043_v8  ;;  %v1046_v24 = vmul.f32 %v1591_v11, %v2294_v15  ;;  %1612 = vpow2.f32 %v795_v40 }
 0x15a   :  { %v1595_v27 = vpop.eup %1594  ;;  %1078 = vst [vmem:[#allocation2 + $0xc8] sm:$0xff] %v1014_v50  ;;  %v1013_v10 = vmul.f32 %v1593_v2, %v2300_v63  ;;  %1614 = vpow2.f32 %v859_v17 }
 0x15b   :  { %v1597_v48 = vpop.eup %1596  ;;  %1110 = vst [vmem:[#allocation2 + $0x1c8] sm:$0xff] %v1046_v24  ;;  %v917_v26 = vadd.f32 1.0, %v1595_v27  ;;  %1616 = vpow2.f32 %v793_v39 }
 0x15c   :  { %v1599_v6 = vpop.eup %1598  ;;  %1077 = vst [vmem:[#allocation2 + $0xc0] sm:$0xff] %v1013_v10  ;;  %v888_v51 = vadd.f32 1.0, %v1597_v48  ;;  %1618 = vpow2.f32 %v857_v36 }
 0x15d   :  { %v1601_v37 = vpop.eup %1600  ;;  %1620 = vrcp.f32 %v917_v26  ;;  %v920_v29 = vadd.f32 1.0, %v1599_v6 }
 0x15e   :  { %v1603_v19 = vpop.eup %1602  ;;  %1622 = vrcp.f32 %v888_v51  ;;  %v887_v15 = vadd.f32 1.0, %v1601_v37 }
 0x15f   :  { %v1605_v41 = vpop.eup %1604  ;;  %1624 = vrcp.f32 %v920_v29  ;;  %v919_v3 = vadd.f32 1.0, %v1603_v19 }
 0x160   :  { %v1607_v18 = vpop.eup %1606  ;;  %1626 = vrcp.f32 %v887_v15  ;;  %v890_v63 = vadd.f32 1.0, %v1605_v41 }
 0x161   :  { %v1609_v52 = vpop.eup %1608  ;;  %1628 = vrcp.f32 %v919_v3  ;;  %v922_v47 = vadd.f32 1.0, %v1607_v18 }
 0x162   :  { %v1611_v53 = vpop.eup %1610  ;;  %1630 = vrcp.f32 %v890_v63  ;;  %v889_v28 = vadd.f32 1.0, %v1609_v52 }
 0x163   :  { %v1613_v54 = vpop.eup %1612  ;;  %1632 = vrcp.f32 %v922_v47  ;;  %v921_v5 = vadd.f32 1.0, %v1611_v53 }
 0x164   :  { %v1615_v61 = vpop.eup %1614  ;;  %1634 = vrcp.f32 %v889_v28  ;;  %v892_v58 = vadd.f32 1.0, %v1613_v54 }
 0x165   :  { %v1617_v43 = vpop.eup %1616  ;;  %1636 = vrcp.f32 %v921_v5  ;;  %v924_v16 = vadd.f32 1.0, %v1615_v61 }
 0x166   :  { %v1619_v34 = vpop.eup %1618  ;;  %1638 = vrcp.f32 %v892_v58  ;;  %v891_v38 = vadd.f32 1.0, %v1617_v43 }
 0x167   :  { %v1621_v7 = vpop.eup %1620  ;;  %1640 = vrcp.f32 %v924_v16  ;;  %v923_v32 = vadd.f32 1.0, %v1619_v34 }
 0x168   :  { %v1623_v30 = vpop.eup %1622  ;;  %v1045_v25 = vmul.f32 %v1621_v7, %v2318_v22  ;;  %1642 = vrcp.f32 %v891_v38 }
 0x169   :  { %v1625_v9 = vpop.eup %1624  ;;  %v1016_v55 = vmul.f32 %v1623_v30, %v2322_v33  ;;  %1644 = vrcp.f32 %v923_v32 }
 0x16a   :  { %v1627_v14 = vpop.eup %1626  ;;  %1109 = vst [vmem:[#allocation2 + $0x1c0] sm:$0xff] %v1045_v25  ;;  %v1048_v57 = vmul.f32 %v1625_v9, %v2326_v0 }
 0x16b   :  { %v1629_v31 = vpop.eup %1628  ;;  %1080 = vst [vmem:[#allocation2 + $0xd8] sm:$0xff] %v1016_v55  ;;  %v1015_v49 = vmul.f32 %v1627_v14, %v2330_v45 }
 0x16c   :  { %v1631_v59 = vpop.eup %1630  ;;  %1112 = vst [vmem:[#allocation2 + $0x1d8] sm:$0xff] %v1048_v57  ;;  %v1047_v42 = vmul.f32 %v1629_v31, %v2340_v46 }
 0x16d   :  { %v1633_v21 = vpop.eup %1632  ;;  %1079 = vst [vmem:[#allocation2 + $0xd0] sm:$0xff] %v1015_v49  ;;  %v1018_v22 = vmul.f32 %v1631_v59, %v2343_v62 }
 0x16e   :  { %v1635_v40 = vpop.eup %1634  ;;  %1111 = vst [vmem:[#allocation2 + $0x1d0] sm:$0xff] %v1047_v42  ;;  %v1050_v33 = vmul.f32 %v1633_v21, %v2346_v1 }
 0x16f   :  { %v1637_v12 = vpop.eup %1636  ;;  %1082 = vst [vmem:[#allocation2 + $0xe8] sm:$0xff] %v1018_v22  ;;  %v1017_v0 = vmul.f32 %v1635_v40, %v2349_v4 }
 0x170   :  { %v1639_v35 = vpop.eup %1638  ;;  %1114 = vst [vmem:[#allocation2 + $0x1e8] sm:$0xff] %v1050_v33  ;;  %v1049_v45 = vmul.f32 %v1637_v12, %v2354_v20 }
 0x171   :  { %v1641_v17 = vpop.eup %1640  ;;  %1081 = vst [vmem:[#allocation2 + $0xe0] sm:$0xff] %v1017_v0  ;;  %v1020_v46 = vmul.f32 %v1639_v35, %v2358_v60 }
 0x172   :  { %v1643_v23 = vpop.eup %1642  ;;  %1113 = vst [vmem:[#allocation2 + $0x1e0] sm:$0xff] %v1049_v45  ;;  %v1052_v62 = vmul.f32 %v1641_v17, %v2363_v56 }
 0x173   :  { %v1645_v8 = vpop.eup %1644  ;;  %1084 = vst [vmem:[#allocation2 + $0xf8] sm:$0xff] %v1020_v46  ;;  %v1019_v1 = vmul.f32 %v1643_v23, %v2367_v13 }
 0x174   :  { %1116 = vst [vmem:[#allocation2 + $0x1f8] sm:$0xff] %v1052_v62  ;;  %v1051_v4 = vmul.f32 %v1645_v8, %v2372_v44 }
 0x175   :  { %1083 = vst [vmem:[#allocation2 + $0xf0] sm:$0xff] %v1019_v1 }
 0x176   :  { %1115 = vst [vmem:[#allocation2 + $0x1f0] sm:$0xff] %v1051_v4 }
 0x177   :  { %1658 = shalt.err (!%p1655_p4)
}
 0x178   :  { %s1659_s17 = scalar_lea.hbm %s2416_s3, 8192 }
 0x179   :  { %p1660_p5 = scmp.ne.s32.totalorder %s2416_s3, %s1659_s17  ;;  %p1663_p6 = scmp.lt.u32.totalorder %s1659_s17, %s2416_s3 }
 0x17b   :  { %p1665_p7 = pnand %p1663_p6, %p1660_p5 }
 0x17d   :  { %1668 = shalt.err (!%p1665_p7)
}
 0x17e   :  { %s1672_s22 = smov 128   ;;  %s1673_s23 = smov 8  }
 0x17f   :  { %1128 = dma.vmem_to_hbm [thread:$0]  %s1123_s13, 8192, %s2416_s3, [#allocation3], %s1672_s22, %s1672_s22, %s1673_s23  }
 0x180   :  { %1669 = dma.done.wait [#allocation3], 8192  }
 0x181   :  { %1670 = vsyncadd [#allocation3], 4294959104 }
 0x182   :  { %1132 = vsyncpa [#allocation3], 1 }

</bundles_post_ra>
